<compile_context>
chip_gen: v6e
topology: v6e:2x2x1
jax: 0.10.0
libtpu: 0.0.40
codegen_flags: <defaults>
</compile_context>

<pallas_src>
from functools import lru_cache

import jax
import jax.numpy as jnp
from jax.experimental import pallas as pl
from jax.experimental.pallas import tpu as pltpu


# Native sublane tile height per itemsize (bytes): f32 -> 8, bf16/f16 -> 16, i8/fp8 -> 32.
_SUBLANE_TILE = {4: 8, 2: 16, 1: 32}


def _swish_kernel(x_ref, o_ref):
    # Upcast to f32 for the math (free — kernel is HBM-bound), store in out dtype.
    x = x_ref[...].astype(jnp.float32)
    # swish(x) = x * sigmoid(x) = 0.5 * x * (tanh(x/2) + 1)   (one EUP op/elem)
    o_ref[...] = (0.5 * x * (jnp.tanh(0.5 * x) + 1.0)).astype(o_ref.dtype)


@lru_cache(maxsize=None)
def _chip_config():
    """Returns (target_block_bytes, vmem_limit_bytes, min_grid_steps) per TPU gen."""
    kind = ""
    try:
        kind = jax.devices()[0].device_kind.lower()
    except Exception:
        pass
    vmem_phys = None
    try:
        vmem_phys = pltpu.get_tpu_info().vmem_capacity_bytes
    except Exception:
        pass
    is_v7 = ("v7" in kind) or (vmem_phys is not None and vmem_phys <= 64 * 1024 * 1024)
    if is_v7:
        # v7x: ~3.2 TB/s HBM, only 64 MiB VMEM/TC, 2 TCs -> bigger blocks, and
        # even grid-step counts so both cores get balanced work.
        return 6 * 1024 * 1024, 40 * 1024 * 1024, 8
    if "v6" in kind:
        # v6e: 128 MiB physical VMEM, raise scope to 64 MiB, 6 MiB blocks.
        return 6 * 1024 * 1024, 64 * 1024 * 1024, 4
    # v5e (and unknown): default scoped VMEM only 16 MiB; 4 MiB blocks + 32 MiB
    # limit keep full double-buffering (in+out x 2 bufs = 16 MiB live).
    return 4 * 1024 * 1024, 32 * 1024 * 1024, 4


def _pick_block_rows(rows, lanes, itemsize, granule, target_block_bytes, min_steps):
    bytes_per_row = lanes * itemsize
    block_rows = max(granule, (target_block_bytes // bytes_per_row) // granule * granule)
    if block_rows >= rows:
        return rows                       # single full-extent block (always legal)
    # Keep >= min_steps grid steps on big tensors so the "parallel" grid can
    # shard across both TensorCores (v7x) and pipeline well everywhere.
    if rows >= min_steps * granule:
        cap = pl.cdiv(rows, min_steps * granule) * granule
        block_rows = min(block_rows, cap)
    block_rows = max(granule, (block_rows // granule) * granule)
    if block_rows >= rows:
        return rows
    # v7x: keep the grid-step count even so the two TCs stay balanced.
    steps = pl.cdiv(rows, block_rows)
    if min_steps >= 8 and steps > 1 and steps % 2 == 1:
        steps += 1
        block_rows = max(granule, pl.cdiv(pl.cdiv(rows, steps), granule) * granule)
        if block_rows >= rows:
            return rows
    return block_rows


def _swish_pallas_2d(x2d, block_rows, vmem_limit):
    rows, lanes = x2d.shape
    n = rows * lanes
    itemsize = jnp.dtype(x2d.dtype).itemsize
    return pl.pallas_call(
        _swish_kernel,
        out_shape=jax.ShapeDtypeStruct((rows, lanes), x2d.dtype),
        grid_spec=pltpu.PrefetchScalarGridSpec(
            num_scalar_prefetch=0,
            grid=(pl.cdiv(rows, block_rows),),     # partial last block is masked
            in_specs=[pl.BlockSpec((block_rows, lanes), lambda i: (i, 0))],
            out_specs=pl.BlockSpec((block_rows, lanes), lambda i: (i, 0)),
        ),
        compiler_params=pltpu.CompilerParams(
            dimension_semantics=("parallel",),
            vmem_limit_bytes=vmem_limit,
        ),
        cost_estimate=pl.CostEstimate(
            flops=4 * n,
            transcendentals=n,
            bytes_accessed=2 * n * itemsize,
        ),
    )(x2d)


def swish(x: jax.Array, *, min_pallas_bytes=256 * 1024, _target_block_bytes=None) -> jax.Array:
    """Elementwise Swish via Pallas. Works for any shape / float dtype."""
    orig_shape = x.shape
    dtype = x.dtype
    n = x.size
    if n == 0:
        return x
    itemsize = jnp.dtype(dtype).itemsize

    # Small activations: pallas_call launch + reshape overhead dominates; a
    # fused XLA elementwise op is strictly faster.
    if n * itemsize < min_pallas_bytes:
        return x * jax.nn.sigmoid(x)

    target_block, vmem_limit, min_steps = _chip_config()
    if _target_block_bytes is not None:
        target_block = _target_block_bytes

    granule = _SUBLANE_TILE.get(itemsize, 8)   # dtype-native sublane tile height

    # Widest lane dim (multiple of 128) that divides n -> no pad, free reshape.
    lanes = 0
    for cand in (1024, 512, 256, 128):
        if n % cand == 0:
            lanes = cand
            break

    flat = x.reshape(-1)
    if lanes == 0:
        # Ragged total: kernel on the largest 128-aligned prefix, tiny jnp tail.
        lanes = 128
        n_main = (n // lanes) * lanes
        if n_main == 0:
            return x * jax.nn.sigmoid(x)
        main, tail = flat[:n_main], flat[n_main:]
        tail_out = tail * jax.nn.sigmoid(tail)
    else:
        n_main = n
        main, tail_out = flat, None

    rows = n_main // lanes
    block_rows = _pick_block_rows(rows, lanes, itemsize, granule, target_block, min_steps)
    out2d = _swish_pallas_2d(main.reshape(rows, lanes), block_rows, vmem_limit)

    out_flat = out2d.reshape(-1)
    if tail_out is not None:
        out_flat = jnp.concatenate([out_flat, tail_out])
    return out_flat.reshape(orig_shape)


if __name__ == "__main__":
    key = jax.random.PRNGKey(0)
    k1, k2, k3, k4 = jax.random.split(key, 4)

    # Module-consistent small NCHW-style activation (takes the fast path).
    x = jax.random.normal(k1, (2, 4, 16, 16), dtype=jnp.float32)
    out = jax.block_until_ready(swish(x))
    ref = x * jax.nn.sigmoid(x)
    assert out.shape == x.shape and out.dtype == x.dtype
    assert jnp.allclose(out, ref, atol=1e-5, rtol=1e-5)

    # Force the Pallas path on the same small input (single full block).
    out_k = jax.block_until_ready(swish(x, min_pallas_bytes=0))
    assert jnp.allclose(out_k, ref, atol=1e-5, rtol=1e-5)

    # bf16 input: 16-row native sublane tile + in-kernel f32 upcast.
    xb = jax.random.normal(k2, (4, 8, 24, 24), dtype=jnp.bfloat16)
    outb = jax.block_until_ready(swish(xb, min_pallas_bytes=0))
    xb32 = xb.astype(jnp.float32)
    refb = (xb32 * jax.nn.sigmoid(xb32)).astype(jnp.bfloat16)
    assert outb.shape == xb.shape and outb.dtype == xb.dtype
    assert jnp.allclose(outb.astype(jnp.float32), refb.astype(jnp.float32),
                        atol=2e-2, rtol=2e-2)

    # Multi-step grid with a masked partial last block (small block override).
    xg = jax.random.normal(k3, (270, 1024), dtype=jnp.float32)
    outg = jax.block_until_ready(
        swish(xg, min_pallas_bytes=0, _target_block_bytes=64 * 1024))
    refg = xg * jax.nn.sigmoid(xg)
    assert jnp.allclose(outg, refg, atol=1e-5, rtol=1e-5)

    # Ragged total (not a multiple of 128): lane-aligned prefix + jnp tail.
    xr = jax.random.normal(k4, (7, 5, 11), dtype=jnp.float32)
    outr = jax.block_until_ready(swish(xr, min_pallas_bytes=0))
    refr = xr * jax.nn.sigmoid(xr)
    assert outr.shape == xr.shape
    assert jnp.allclose(outr, refr, atol=1e-5, rtol=1e-5)

    print("KERNEL_OK")
</pallas_src>

<mosaic_0001>
module attributes {stable_mosaic.version = 11 : i64} {
  func.func @_swish_kernel(%arg0: i32, %arg1: memref<2x1024xf32, #tpu.memory_space<vmem>>, %arg2: memref<2x1024xf32, #tpu.memory_space<vmem>>) attributes {dimension_semantics = [#tpu.dimension_semantics<parallel>], iteration_bounds = array<i64: 1>, scalar_prefetch = 0 : i64, scratch_operands = 0 : i64, tpu.core_type = #tpu.core_type<tc>, window_params = [{transform_indices = @transform_0, window_bounds = array<i64: 2, 1024>}, {transform_indices = @transform_1, window_bounds = array<i64: 2, 1024>}]} {
    %c0 = arith.constant 0 : index
    %c0_0 = arith.constant 0 : index
    %0 = vector.load %arg1[%c0, %c0_0] : memref<2x1024xf32, #tpu.memory_space<vmem>>, vector<2x1024xf32>
    %cst = arith.constant 5.000000e-01 : f32
    %1 = vector.broadcast %cst : f32 to vector<2x1024xf32>
    %2 = arith.mulf %1, %0 : vector<2x1024xf32>
    %cst_1 = arith.constant 5.000000e-01 : f32
    %3 = vector.broadcast %cst_1 : f32 to vector<2x1024xf32>
    %4 = arith.mulf %3, %0 : vector<2x1024xf32>
    %5 = math.tanh %4 : vector<2x1024xf32>
    %cst_2 = arith.constant 1.000000e+00 : f32
    %6 = vector.broadcast %cst_2 : f32 to vector<2x1024xf32>
    %7 = arith.addf %5, %6 : vector<2x1024xf32>
    %8 = arith.mulf %2, %7 : vector<2x1024xf32>
    %c0_3 = arith.constant 0 : index
    %c0_4 = arith.constant 0 : index
    %9 = vector.load %arg2[%c0_3, %c0_4] : memref<2x1024xf32, #tpu.memory_space<vmem>>, vector<2x1024xf32>
    tpu.vector_store %arg2[%c0_3, %c0_4], %8 {strides = array<i32>} : memref<2x1024xf32, #tpu.memory_space<vmem>>, vector<2x1024xf32>,
    return
  }
  func.func @transform_0(%arg0: i32) -> (i32, i32) {
    %c0_i32 = arith.constant 0 : i32
    %c0_i32_0 = arith.constant 0 : i32
    return %arg0, %c0_i32 : i32, i32
  }
  func.func @transform_1(%arg0: i32) -> (i32, i32) {
    %c0_i32 = arith.constant 0 : i32
    %c0_i32_0 = arith.constant 0 : i32
    return %arg0, %c0_i32 : i32, i32
  }
}

</mosaic_0001>

<bundles_post_ra>
// kernel: tpu_custom_call.1
= control target key start
LH: loop header
LB: loop body
LE: loop exit
PB: predicated region body
PF: predicated region fallthrough
CT: control target
= control target key end

     0   :  { %6 = vsyncpa [#allocation3], 0  ;;  %s116_s0 = inlined_call_operand.hbm [shape: f32[2,1024], index: 0, kind: input, shape index: {}]   ;;  %s117_s1 = inlined_call_operand.hbm [shape: f32[2,1024], index: 1, kind: output, shape index: {}]  }
   0x1   :  { %7 = vsyncpa [#allocation4], 0  ;;  %s98_s6 = smov [#allocation2]  }
   0x2   :  { %s14_s7 = sshll.u32 %s98_s6, 4  ;;  %s15_s7 = int_to_ptr.vmem [resolvable:$true] %s14_s7 }
   0x3   :  { %s62_s8 = scalar_lea.vmem %s15_s7, 256  ;;  %p67_p1 = scmp.lt.s32.totalorder %s15_s7, %s15_s7 }
   0x4   :  { %p63_p0 = scmp.ne.s32.totalorder %s15_s7, %s62_s8  ;;  %p68_p2 = scmp.lt.s32.totalorder %s62_s8, %s62_s8 }
   0x6   :  { %p69_p3 = por %p68_p2, %p67_p1 }
   0x8   :  { %p70_p4 = pnand %p69_p3, %p63_p0 }
   0xa   :  { %73 = shalt.err (!%p70_p4)
}
   0xb   :  { %17 = dma.hbm_to_vmem [thread:$0]  %s116_s0, 256, %s15_s7, [#allocation3]  }
   0xc   :  { %94 = dma.done.wait [#allocation3], 256  }
   0xd   :  { %95 = vsyncadd [#allocation3], 4294967040  ;;  %v21_v0 = vld [vmem:[#allocation2] sm:$0xff]  ;;  %v22_v1 = vld [vmem:[#allocation2 + $0x8] sm:$0xff]  ;;  %s99_s11 = smov [#allocation5]  }
   0xe   :  { %v23_v2 = vmul.f32 0.5, %v21_v0  ;;  %v24_v3 = vmul.f32 0.5, %v22_v1  ;;  %s39_s12 = sshll.u32 %s99_s11, 4  ;;  %s40_s12 = int_to_ptr.vmem [resolvable:$true] %s39_s12 }
   0xf   :  { %s74_s0 = scalar_lea.vmem %s40_s12, 256  ;;  %p79_p6 = scmp.lt.s32.totalorder %s40_s12, %s40_s12 }
  0x10   :  { %50 = vtanh.f32 %v23_v2  ;;  %p75_p5 = scmp.ne.s32.totalorder %s40_s12, %s74_s0  ;;  %p80_p7 = scmp.lt.s32.totalorder %s74_s0, %s74_s0 }
  0x11   :  { %52 = vtanh.f32 %v24_v3 }
  0x12   :  { %p81_p8 = por %p80_p7, %p79_p6 }
  0x14   :  { %p82_p9 = pnand %p81_p8, %p75_p5 }
  0x1d   :  { %v51_v4 = vpop.eup %50 }
  0x1e   :  { %v53_v5 = vpop.eup %52  ;;  %v27_v6 = vadd.f32 1.0, %v51_v4 }
  0x1f   :  { %v28_v7 = vadd.f32 1.0, %v53_v5 }
  0x20   :  { %v29_v8 = vmul.f32 %v27_v6, %v23_v2 }
  0x21   :  { %v30_v9 = vmul.f32 %v28_v7, %v24_v3 }
  0x22   :  { %31 = vst [vmem:[#allocation5] sm:$0xff] %v29_v8 }
  0x23   :  { %32 = vst [vmem:[#allocation5 + $0x8] sm:$0xff] %v30_v9 }
  0x24   :  { %85 = shalt.err (!%p82_p9)
}
  0x25   :  { %42 = dma.vmem_to_hbm [thread:$0]  %s40_s12, 256, %s117_s1, [#allocation4]  }
  0x26   :  { %96 = dma.done.wait [#allocation4], 256  }
  0x27   :  { %97 = vsyncadd [#allocation4], 4294967040 }
  0x28   :  { %46 = vsyncpa [#allocation3], 1 }
  0x29   :  { %47 = vsyncpa [#allocation4], 1 }

</bundles_post_ra>
